<compile_context>
chip_gen: v7x
topology: tpu7x:2x2x1
jax: 0.10.0
libtpu: 0.0.40
codegen_flags: <defaults>
</compile_context>

<pallas_src>
import math

import jax
import jax.numpy as jnp
from jax.experimental import pallas as pl
from jax.experimental.pallas import tpu as pltpu

_TWO_PI = 2.0 * math.pi


def _round_up(a: int, b: int) -> int:
    return ((a + b - 1) // b) * b


def _cdiv(a: int, b: int) -> int:
    return (a + b - 1) // b


def _gfft_kernel(x_ref, b_ref, out_ref):
    hp = b_ref.shape[1]  # padded half-width (multiple of 128 in the fast path)
    # x @ B on the MXU.  HIGHEST precision keeps full f32 accuracy (default
    # precision demotes f32 operands to bf16 passes -> garbage once the result
    # is fed through sin/cos of 2*pi*scale-sized arguments).
    t = jnp.dot(
        x_ref[...],
        b_ref[...],
        preferred_element_type=jnp.float32,
        precision=jax.lax.Precision.HIGHEST,
    )
    # Shared period-1 range reduction on the VPU: sin/cos(2*pi*t) has period 1
    # in t, so reduce once (floor + sub) and feed the small argument to both.
    u = t - jnp.floor(t + 0.5)          # u in [-0.5, 0.5]
    a = _TWO_PI * u                     # |a| <= pi
    # Fused output slab: sin -> left half, cos -> right half.  With hp a
    # multiple of 128 both column ranges are unmasked lane-aligned stores.
    out_ref[:, :hp] = jnp.sin(a).astype(out_ref.dtype)
    out_ref[:, hp:] = jnp.cos(a).astype(out_ref.dtype)


def make_fourier_B(key, input_dim: int, n_fourier_feats: int, scales):
    """Deterministic synthetic version of the torch buffer `B`."""
    n_scale_feats = n_fourier_feats // (2 * len(scales))
    assert n_scale_feats * 2 * len(scales) == n_fourier_feats, (
        f"n_fourier_feats: {n_fourier_feats} must be divisible by "
        f"2 * len(scales) = {2 * len(scales)}"
    )
    keys = jax.random.split(key, len(scales))
    parts = [
        jax.random.normal(k, (input_dim, n_scale_feats), dtype=jnp.float32) * scale
        for k, scale in zip(keys, scales)
    ]
    return jnp.concatenate(parts, axis=1)  # (input_dim, n_fourier_feats // 2)


def _choose_tile_m(M: int, dim: int, half_p: int, max_tile: int = 1024) -> int:
    """Row-tile size that keeps the pipelined footprint inside the VMEM limit."""
    # Double-buffered pipelined blocks: x tile + fused (sin|cos) output tile.
    pipelined_per_row = 2 * (4 * dim + 4 * 2 * half_p)
    # Live f32 intermediates in the body (t, reduced arg, sin, cos) — conservative.
    live_per_row = 4 * 4 * half_p
    per_row = pipelined_per_row + live_per_row
    fixed = 2 * 4 * dim * half_p            # B (possibly double-buffered)
    budget = 24 * 1024 * 1024               # leaves headroom under the 32 MiB limit
    tm = max(8, (budget - fixed) // per_row)
    tm = max(8, min(max_tile, (tm // 8) * 8))
    # Ensure >= 2 row tiles when possible so ("parallel",) can use both
    # TensorCores on v7x (harmless on 1-TC chips).
    if M > 8:
        tm = min(tm, _round_up(_cdiv(M, 2), 8))
    return max(8, min(tm, _round_up(M, 8)))


def gaussian_fourier_feature_transform(x, B, out_dtype=jnp.float32):
    """x: [..., time, input_dim] -> [..., time, n_fourier_feats]."""
    assert x.ndim >= 2, f"Expected 2 or more dimensional input (got {x.ndim}D input)"
    *lead, time, dim = x.shape
    assert dim == B.shape[0], (
        f"Expected input to have {B.shape[0]} channels (got {dim} channels)"
    )
    half = B.shape[1]
    half_p = _round_up(half, 128)           # lane-dense output stores

    M = time
    for s in lead:
        M *= s
    x2 = x.reshape(M, dim).astype(jnp.float32)

    b_p = B.astype(jnp.float32)
    if half_p != half:
        b_p = jnp.pad(b_p, ((0, 0), (0, half_p - half)))

    tm = _choose_tile_m(M, dim, half_p)
    grid = (pl.cdiv(M, tm),)                # ragged final block is masked by Pallas

    cost = pl.CostEstimate(
        flops=int(2 * M * dim * half_p + 4 * M * half_p),
        transcendentals=int(2 * M * half_p),
        bytes_accessed=int(M * dim * 4 + dim * half_p * 4 + M * 2 * half_p * 4),
    )

    out = pl.pallas_call(
        _gfft_kernel,
        out_shape=jax.ShapeDtypeStruct((M, 2 * half_p), out_dtype),
        grid=grid,
        in_specs=[
            pl.BlockSpec((tm, dim), lambda i: (i, 0)),      # x rows march over the grid
            pl.BlockSpec((dim, half_p), lambda i: (0, 0)),  # B resident across all tiles
        ],
        out_specs=pl.BlockSpec((tm, 2 * half_p), lambda i: (i, 0)),  # fused sin|cos slab
        compiler_params=pltpu.CompilerParams(
            dimension_semantics=("parallel",),
            vmem_limit_bytes=32 * 1024 * 1024,
        ),
        cost_estimate=cost,
    )(x2, b_p)

    if half_p != half:
        # Only taken when half is not a multiple of 128 (small configs).
        out = jnp.concatenate([out[:, :half], out[:, half_p:half_p + half]], axis=-1)
    return out.reshape(*lead, time, 2 * half)


if __name__ == "__main__":
    import numpy as np

    # Small shapes consistent with the module's forward:
    # x: [batch, time, input_dim], B: [input_dim, n_fourier_feats // 2]
    batch, time, input_dim = 2, 8, 4
    n_fourier_feats = 64
    scales = [1.0, 10.0]

    key = jax.random.PRNGKey(0)
    kx, kb = jax.random.split(key)
    x = jax.random.normal(kx, (batch, time, input_dim), dtype=jnp.float32)
    B = make_fourier_B(kb, input_dim, n_fourier_feats, scales)

    out = gaussian_fourier_feature_transform(x, B)
    out = jax.block_until_ready(out)

    # Host-side float64 reference (avoids TPU default bf16 matmul precision and
    # f32 sin/cos range-reduction differences in the oracle itself).
    x64 = np.asarray(x, dtype=np.float64)
    B64 = np.asarray(B, dtype=np.float64)
    arg = 2.0 * math.pi * np.einsum("btn,nd->btd", x64, B64)
    ref = np.concatenate([np.sin(arg), np.cos(arg)], axis=-1)

    assert out.shape == (batch, time, n_fourier_feats), out.shape
    # f32 kernel vs f64 oracle: argument rounding (~1e-7 * |2*pi*x@B|) bounds the
    # achievable accuracy; 1e-3 is comfortably above it and still meaningful for
    # outputs in [-1, 1].
    assert np.allclose(np.asarray(out, dtype=np.float64), ref, atol=1e-3, rtol=1e-3), (
        "mismatch vs float64 reference"
    )

    print("KERNEL_OK")
</pallas_src>

<mosaic_0001>
module attributes {stable_mosaic.version = 11 : i64} {
  func.func @_gfft_kernel(%arg0: i32, %arg1: memref<8x4xf32, #tpu.memory_space<vmem>>, %arg2: memref<4x128xf32, #tpu.memory_space<vmem>>, %arg3: memref<8x256xf32, #tpu.memory_space<vmem>>) attributes {dimension_semantics = [#tpu.dimension_semantics<parallel>], iteration_bounds = array<i64: 2>, scalar_prefetch = 0 : i64, scratch_operands = 0 : i64, tpu.core_type = #tpu.core_type<tc>, window_params = [{transform_indices = @transform_0, window_bounds = array<i64: 8, 4>}, {pipeline_mode = #tpu.pipeline_mode<synchronous>, transform_indices = @transform_1, window_bounds = array<i64: 4, 128>}, {transform_indices = @transform_2, window_bounds = array<i64: 8, 256>}]} {
    %c0 = arith.constant 0 : index
    %c0_0 = arith.constant 0 : index
    %0 = vector.load %arg1[%c0, %c0_0] : memref<8x4xf32, #tpu.memory_space<vmem>>, vector<8x4xf32>
    %c0_1 = arith.constant 0 : index
    %c0_2 = arith.constant 0 : index
    %1 = vector.load %arg2[%c0_1, %c0_2] : memref<4x128xf32, #tpu.memory_space<vmem>>, vector<4x128xf32>
    %cst = arith.constant dense<0.000000e+00> : vector<8x128xf32>
    %2 = tpu.matmul %0, %1, %cst {dimension_numbers = #tpu.dot_dimension_numbers<[1], [0], [0], [1], [0, 0, 1, 1], [], []>, precision = #tpu.contract_precision<fp32>} : vector<8x4xf32>, vector<4x128xf32>, vector<8x128xf32> -> vector<8x128xf32>
    %cst_3 = arith.constant 5.000000e-01 : f32
    %3 = vector.broadcast %cst_3 : f32 to vector<8x128xf32>
    %4 = arith.addf %2, %3 : vector<8x128xf32>
    %5 = math.floor %4 : vector<8x128xf32>
    %6 = arith.subf %2, %5 : vector<8x128xf32>
    %cst_4 = arith.constant 6.28318548 : f32
    %7 = vector.broadcast %cst_4 : f32 to vector<8x128xf32>
    %8 = arith.mulf %7, %6 : vector<8x128xf32>
    %9 = math.sin %8 : vector<8x128xf32>
    %c0_5 = arith.constant 0 : index
    %c0_6 = arith.constant 0 : index
    %10 = vector.load %arg3[%c0_5, %c0_6] : memref<8x256xf32, #tpu.memory_space<vmem>>, vector<8x128xf32>
    tpu.vector_store %arg3[%c0_5, %c0_6], %9 {strides = array<i32>} : memref<8x256xf32, #tpu.memory_space<vmem>>, vector<8x128xf32>,
    %11 = math.cos %8 : vector<8x128xf32>
    %c0_7 = arith.constant 0 : index
    %c128 = arith.constant 128 : index
    %12 = vector.load %arg3[%c0_7, %c128] : memref<8x256xf32, #tpu.memory_space<vmem>>, vector<8x128xf32>
    tpu.vector_store %arg3[%c0_7, %c128], %11 {strides = array<i32>} : memref<8x256xf32, #tpu.memory_space<vmem>>, vector<8x128xf32>,
    return
  }
  func.func @transform_0(%arg0: i32) -> (i32, i32) {
    %c0_i32 = arith.constant 0 : i32
    %c0_i32_0 = arith.constant 0 : i32
    return %arg0, %c0_i32 : i32, i32
  }
  func.func @transform_1(%arg0: i32) -> (i32, i32) {
    %c0_i32 = arith.constant 0 : i32
    %c0_i32_0 = arith.constant 0 : i32
    %c0_i32_1 = arith.constant 0 : i32
    return %c0_i32, %c0_i32_0 : i32, i32
  }
  func.func @transform_2(%arg0: i32) -> (i32, i32) {
    %c0_i32 = arith.constant 0 : i32
    %c0_i32_0 = arith.constant 0 : i32
    return %arg0, %c0_i32 : i32, i32
  }
}

</mosaic_0001>

<bundles_post_ra>
// kernel: tpu_custom_call.1
= control target key start
LH: loop header
LB: loop body
LE: loop exit
PB: predicated region body
PF: predicated region fallthrough
CT: control target
= control target key end

     0   :  { %7 = vsyncpa [#allocation3], 0  ;;  %s1230_s0 = inlined_call_operand.vmem [shape: f32[16,4], index: 0, kind: input, shape index: {}]   ;;  %s1231_s1 = inlined_call_operand.vmem [shape: f32[4,128], index: 1, kind: input, shape index: {}]   ;;  %s1232_s2 = inlined_call_operand.hbm [shape: f32[16,256], index: 2, kind: output, shape index: {}]  }
   0x1   :  { %9 = vsyncpa [#allocation3 + $0x1], 0  ;;  %s1096_s9 = smov 0   ;;  %s1098_s10 = smov 0  }
   0x2   :  { %s1100_s11 = smov 0   ;;  %s1102_s12 = smov 0  }
   0x3 LB: > { %s1117_s13 = sadd.s32 4294967295, %s1070_s12   ;;  %s882_s14 = sadd.s32 4294967294, %s1070_s12   ;;  %s1070_s12 = sphi %s1102_s12, %s1238_s12   ;;  %s1066_s11 = sphi %s1100_s11, %s1237_s11   ;;  %s1062_s10 = sphi %s1098_s10, %s1236_s10   ;;  %s1058_s9 = sphi %s1096_s9, %s1235_s9  }
   0x4   : > { %s1121_s15 = sadd.s32 1, %s1070_s12   ;;  %s69_s16 = sadd.s32 1, %s1066_s11 }
   0x5   : > { %s66_s17 = ssub.s32 %s1070_s12, %s1121_s15  ;;  %p79_p0 = scmp.ne.s32.totalorder %s1066_s11, %s1062_s10 }
   0x6   : > { %p67_p1 = scmp.eq.s32.totalorder %s66_s17, 0  ;;  %p80_p2 = scmp.eq.s32.totalorder %s1117_s13, 1 }
   0x7   : > { %p85_p3 = scmp.ne.s32.totalorder %s1062_s10, %s1058_s9  ;;  %p86_p4 = scmp.eq.s32.totalorder %s882_s14, 1 }
   0x8   : > { %s1132_s18 = scalar_select %p67_p1, %s1066_s11, %s69_s16  }
   0x9   : > { %p1134_p5 = por %p80_p2, %p79_p0  ;;  %p1138_p6 = por %p86_p4, %p85_p3 }
   0xa   : > { %p885_p7 = scmp.ge.s32.totalorder %s1070_s12, 1  ;;  %p114_p8 = scmp.lt.s32.totalorder %s1070_s12, 3 }
   0xc   : > { %p115_p9 = pnand %p885_p7, %p114_p8 }
   0xd   : > { %v140_v0 = vld [vmem:[%s1231_s1] sm:$0xf] (!%p115_p9)  ;;  %vm145_vm0 = vcmask (!%p115_p9), 1043456   ;;  %p135_p10 = scmp.lt.s32.totalorder (!%p115_p9), %s1117_s13, 1  ;;  %v1072_v1 = vmov (!%p115_p9), 0.0   ;;  %vm1073_vm1 = vmmov (!%p115_p9), 0  }
   0xe   : > { %118 = sbr.rel (%p115_p9) target bundleno = 368 (0x170), region = 28  ;;  %929 = vmatprep.subr.mxu0 (!%p115_p9), %v1072_v1  ;;  %v147_v2 = vsel (!%p115_p9), %vm145_vm0, %v140_v0, 0  ;;  %931 = vmatprep.mubr.msk.f32.mxu0 (!%p115_p9), %vm1073_vm1, %v1072_v1  ;;  %vm141_vm2 = vcmask (!%p115_p9), 31744   ;;  %v1074_v34 = vmov (!%p115_p9), 683565275   ;;  %s132_s28 = sand.u32 (!%p115_p9), 1, %s1062_s10  }
   0xf   : > { %v150_v3 = vand.u32 (!%p115_p9), 4294901760, %v147_v2  ;;  %914 = vmatprep.subr.mxu1 (!%p115_p9), %v1072_v1  ;;  %916 = vmatprep.mubr.msk.f32.mxu1 (!%p115_p9), %vm1073_vm1, %v1072_v1  ;;  %v1075_v36 = vmov (!%p115_p9), 2475754826   ;;  %v1076_v39 = vmov (!%p115_p9), 2131351028   ;;  %s886_s29 = sshll.u32 (!%p115_p9), %s132_s28, 4 }
  0x10   : > { %v1077_v42 = vmov (!%p115_p9), 2102212464   ;;  %v1078_v45 = vmov (!%p115_p9), 920167782   ;;  %v1079_v48 = vmov (!%p115_p9), 1326507024  }
  0x11   : > { %v227_v4 = vsub.f32 (!%p115_p9), %v147_v2, %v150_v3  ;;  %930 = vmatpush3.msra.mxu0 (!%p115_p9), %v150_v3  ;;  %915 = vmatpush3.msra.mxu1 (!%p115_p9), %v150_v3  ;;  %s901_s30 = sshll.u32 (!%p115_p9), %s1117_s13, 8  ;;  %s134_s3 = scalar_lea.vmem (!%p115_p9), [#allocation2], %s886_s29 }
  0x12   : > { %919 = vmatprep.subr.mxu1 (!%p115_p9), %v1072_v1  ;;  %934 = vmatprep.subr.mxu0 (!%p115_p9), %v1072_v1  ;;  %s823_s4 = sshll.u32 (!%p115_p9), %s134_s3, 4  ;;  %s1186_s7 = scalar_lea.hbm (!%p115_p9), %s1232_s2, %s901_s30  ;;  %s1188_s4 = int_to_ptr.vmem [resolvable:$true] %s823_s4 }
  0x13   : > { %v228_v7 = vand.u32 (!%p115_p9), 4294901760, %v227_v4  ;;  %s809_s8 = scalar_lea.sflag (!%p115_p9), [#allocation3], %s132_s28  ;;  %s1080_s14 = smov (!%p115_p9), [#allocation2]  }
  0x14   : > { %s1012_s16 = sshll.u32 (!%p115_p9), %s1080_s14, 4  ;;  %s1013_s16 = int_to_ptr.vmem [resolvable:$false] %s1012_s16 }
  0x15   : > { %s136_s23 = scalar_select %p135_p10, %s1117_s13, 1  ;;  %v229_v10 = vsub.f32 %v227_v4, %v228_v7 }
  0x16   : > { %s1008_s13 = scalar_lea.vmem %s1188_s4, 256  ;;  %s1014_s17 = scalar_lea.vmem %s1013_s16, 512 }
  0x17   : > { %s887_s24 = sshll.u32 %s136_s23, 3  ;;  %v230_v13 = vand.u32 4294901760, %v229_v10  ;;  %p1009_p11 = scmp.ne.s32.totalorder %s1188_s4, %s1008_s13 }
  0x18   : > { %s138_s27 = scalar_lea.vmem %s1230_s0, %s887_s24  ;;  %p1015_p0 = scmp.lt.s32.totalorder %s1188_s4, %s1013_s16 }
  0x19   : > { %v139_v5 = vld [vmem:[%s138_s27] sm:$0xff]  ;;  %p1010_p12 = pnand %p1009_p11, %p1134_p5  ;;  %p1016_p1 = scmp.lt.s32.totalorder %s1014_s17, %s1008_s13 }
  0x1a   : > { %v143_v6 = vsel %vm141_vm2, %v139_v5, 0 }
  0x1b   : > { %v215_v8 = vand.u32 4294901760, %v143_v6  ;;  %p1011_p13 = pneg %p1010_p12  ;;  %p1017_p2 = por %p1016_p1, %p1015_p0 }
  0x1d   : > { %v216_v9 = vsub.f32 %v143_v6, %v215_v8  ;;  %p1018_p3 = pnand %p1017_p2, %p1011_p13 }
  0x1f   : > { %v217_v11 = vand.u32 4294901760, %v216_v9 }
  0x21   : > { %932 = vmatmul.mubr.f32.vlgmr.msra.gmra.mrb[0].mxu0 %v217_v11  ;;  %v218_v12 = vsub.f32 %v216_v9, %v217_v11 }
  0x22   : > { %935 = vmatpush3.msra.mxu0 %v228_v7  ;;  %936 = vmatprep.mubr.msk.f32.mxu0 %vm1073_vm1, %v1072_v1 }
  0x23   : > { %v219_v14 = vand.u32 4294901760, %v218_v12  ;;  %939 = vmatprep.subr.mxu0 %v1072_v1 }
  0x25   : > { %917 = vmatmul.mubr.f32.vlgmr.msra.gmra.mrb[0].mxu1 %v219_v14 }
  0x26   : > { %920 = vmatpush3.msra.mxu1 %v230_v13  ;;  %921 = vmatprep.mubr.msk.f32.mxu1 %vm1073_vm1, %v1072_v1 }
  0x27   : > { %924 = vmatprep.subr.mxu1 %v1072_v1 }
  0x29   : > { %937 = vmatmul.mubr.f32.vlgmr.msra.gmra.mrb[0].mxu0 %v215_v8 }
  0x2a   : > { %940 = vmatpush3.msra.mxu0 %v150_v3  ;;  %941 = vmatprep.mubr.msk.f32.mxu0 %vm1073_vm1, %v1072_v1 }
  0x2d   : > { %922 = vmatmul.mubr.f32.vlgmr.msra.gmra.mrb[0].mxu1 %v215_v8 }
  0x2e   : > { %925 = vmatpush3.msra.mxu1 %v227_v4  ;;  %926 = vmatprep.mubr.msk.f32.mxu1 %vm1073_vm1, %v1072_v1 }
  0x31   : > { %942 = vmatmul.mubr.f32.vlgmr.msra.gmra.mrb[0].mxu0 %v215_v8 }
  0x35   : > { %927 = vmatmul.mubr.f32.vlgmr.msra.gmra.mrb[0].mxu1 %v216_v9 }
 0x104   : > { %v591_v15 = vpop.f32.mrb[0].mxu0 }
 0x105   : > { %v943_v16 = vpop.f32.mrb[1].mxu0 }
 0x108   : > { %v371_v17 = vpop.f32.mrb[0].mxu1 }
 0x109   : > { %v944_v18 = vadd.f32 %v591_v15, %v371_v17  ;;  %v928_v19 = vpop.f32.mrb[1].mxu1 }
 0x10b   : > { %v595_v20 = vadd.f32 0.5, %v944_v18 }
 0x10d   : > { %v596_v21 = vfloor.f32 %v595_v20 }
 0x10f   : > { %v597_v22 = vsub.f32 %v944_v18, %v596_v21 }
 0x111   : > { %v1158_v23 = vmul.f32 6.2831855, %v597_v22 }
 0x113   : > { %v602_v24 = vand.u32 2139095040, %v1158_v23  ;;  %v599_v28 = vand.u32 2147483647, %v1158_v23  ;;  %vm601_vm10 = vcmp.lt.s32.totalorder %v1158_v23, 0  ;;  %vm691_vm2 = vweird.f32 %v1158_v23 }
 0x115   : > { %v603_v25 = vshrl.u32 %v602_v24, 23  ;;  %v606_v31 = vand.u32 8388607, %v599_v28  ;;  %vm600_vm11 = vcmp.le.f32.partialorder %v599_v28, 0.7853982 }
 0x117   : > { %v888_v26 = vadd.s32 4294967169, %v603_v25  ;;  %v607_v50 = vor.u32 8388608, %v606_v31 }
 0x119   : > { %v609_v27 = vadd.s32 1, %v888_v26  ;;  %v647_v0 = vshll.u32 %v607_v50, 8 }
 0x11b   : > { %vm610_vm3 = vcmp.gt.s32.totalorder %v609_v27, 0 }
 0x11c   : > { %v611_v29 = vsel %vm610_vm3, %v609_v27, 0 }
 0x11d   : > { %v613_v30 = vand.u32 31, %v611_v29  ;;  %v612_v33 = vshrl.u32 %v611_v29, 5 }
 0x11f   : > { %v614_v32 = vsub.s32 32, %v613_v30  ;;  %v616_v35 = vshll.u32 %v1074_v34, %v613_v30  ;;  %v619_v37 = vshll.u32 %v1075_v36, %v613_v30  ;;  %v622_v41 = vshll.u32 %v1076_v39, %v613_v30 }
 0x120   : > { %v625_v44 = vshll.u32 %v1077_v42, %v613_v30  ;;  %v628_v47 = vshll.u32 %v1078_v45, %v613_v30  ;;  %vm631_vm4 = vcmp.lt.s32.totalorder %v612_v33, 1  ;;  %vm634_vm5 = vcmp.lt.s32.totalorder %v612_v33, 4 }
 0x121   : > { %v617_v38 = vshrl.u32 %v1075_v36, %v614_v32  ;;  %v620_v40 = vshrl.u32 %v1076_v39, %v614_v32  ;;  %v623_v43 = vshrl.u32 %v1077_v42, %v614_v32  ;;  %v626_v46 = vshrl.u32 %v1078_v45, %v614_v32 }
 0x122   : > { %v629_v49 = vshrl.u32 %v1079_v48, %v614_v32  ;;  %v615_v59 = vshrl.u32 %v1074_v34, %v614_v32  ;;  %vm633_vm6 = vcmp.lt.s32.totalorder %v612_v33, 3  ;;  %vm632_vm7 = vcmp.lt.s32.totalorder %v612_v33, 2 }
 0x123   : > { %v618_v51 = vor.u32 %v617_v38, %v616_v35  ;;  %v621_v52 = vor.u32 %v620_v40, %v619_v37  ;;  %v624_v53 = vor.u32 %v623_v43, %v622_v41  ;;  %v627_v54 = vor.u32 %v626_v46, %v625_v44 }
 0x124   : > { %v630_v55 = vor.u32 %v629_v49, %v628_v47 }
 0x125   : > { %v636_v56 = vsel %vm634_vm5, %v624_v53, 2102212464  ;;  %v639_v57 = vsel %vm631_vm4, %v618_v51, %v621_v52  ;;  %v643_v58 = vsel %vm631_vm4, %v621_v52, %v624_v53  ;;  %v640_v60 = vsel %vm634_vm5, %v627_v54, 920167782 }
 0x126   : > { %v644_v61 = vsel %vm634_vm5, %v630_v55, 1326507024  ;;  %v641_v62 = vsel %vm633_vm6, %v624_v53, %v640_v60  ;;  %v635_v1 = vsel %vm631_vm4, %v615_v59, %v618_v51  ;;  %v637_v2 = vsel %vm633_vm6, %v621_v52, %v636_v56 }
 0x127   : > { %v645_v63 = vsel %vm633_vm6, %v627_v54, %v644_v61  ;;  %v642_v3 = vsel %vm632_vm7, %v639_v57, %v641_v62  ;;  %v638_v9 = vsel %vm632_vm7, %v635_v1, %v637_v2 }
 0x128   : > { %v646_v4 = vsel %vm632_vm7, %v643_v58, %v645_v63  ;;  %v1167_v7 = vmul.u32.u64.low %v647_v0, %v642_v3  ;;  %v1168_v8 = vmul.u32.u64.high %v647_v0, %v642_v3, %v1167_v7  ;;  %v654_v11 = vmul.u32 %v647_v0, %v638_v9 }
 0x129   : > { %v1164_v5 = vmul.u32.u64.low %v647_v0, %v646_v4  ;;  %v1165_v6 = vmul.u32.u64.high %v647_v0, %v646_v4, %v1164_v5 }
 0x12a   : > { %v657_v10 = vadd.s32 1, %v1168_v8 }
 0x12b   : > { %vm656_vm8 = vc.u32 %v1165_v6, %v1167_v7  ;;  %v655_v24 = vadd.s32 %v1167_v7, %v1165_v6 }
 0x12c   : > { %v658_v12 = vsel %vm656_vm8, %v657_v10, %v1168_v8 }
 0x12d   : > { %v659_v13 = vadd.s32 %v658_v12, %v654_v11 }
 0x12f   : > { %v660_v14 = vadd.s32 536870912, %v659_v13 }
 0x131   : > { %v661_v15 = vshrl.u32 %v660_v14, 30 }
 0x133   : > { %v662_v16 = vshll.u32 %v661_v15, 30  ;;  %v685_v37 = vsub.s32 4, %v661_v15 }
 0x135   : > { %v663_v17 = vsub.s32 %v659_v13, %v662_v16  ;;  %v686_v40 = vsel %vm601_vm10, %v685_v37, %v661_v15 }
 0x136   : > { %v688_v42 = vsel %vm600_vm11, 0, %v686_v40 }
 0x137   : > { %v665_v18 = vsub.s32 0, %v663_v17  ;;  %v692_v43 = vadd.s32 3, %v688_v42  ;;  %v797_v45 = vand.u32 3, %v688_v42 }
 0x139   : > { %v889_v19 = vmin.u32 %v665_v18, %v663_v17  ;;  %v693_v44 = vand.u32 3, %v692_v43  ;;  %vm802_vm13 = vcmp.eq.s32.totalorder %v797_v45, 2  ;;  %vm799_vm15 = vcmp.eq.s32.totalorder %v797_v45, 0 }
 0x13a   : > { %vm798_vm1 = vcmp.lt.s32.totalorder %v797_v45, 2 }
 0x13b   : > { %v667_v20 = vclz %v889_v19  ;;  %vm698_vm12 = vcmp.eq.s32.totalorder %v693_v44, 2  ;;  %vm695_vm14 = vcmp.eq.s32.totalorder %v693_v44, 0  ;;  %vm694_vm0 = vcmp.lt.s32.totalorder %v693_v44, 2 }
 0x13d   : > { %v890_v21 = vadd.s32 4294967294, %v667_v20 }
 0x13f   : > { %vm891_vm9 = vcmp.lt.s32.totalorder %v890_v21, 0 }
 0x140   : > { %v670_v22 = vsel %vm891_vm9, 0, %v890_v21 }
 0x141   : > { %v671_v25 = vsub.s32 32, %v670_v22  ;;  %v675_v26 = vsub.s32 4294967266, %v670_v22  ;;  %v672_v27 = vshll.u32 %v663_v17, %v670_v22 }
 0x143   : > { %v673_v29 = vshrl.u32 %v655_v24, %v671_v25  ;;  %v676_v30 = vadd.s32 127, %v675_v26 }
 0x145   : > { %v674_v31 = vor.u32 %v673_v29, %v672_v27  ;;  %v677_v32 = vshll.u32 %v676_v30, 23 }
 0x147   : > { %v678_v33 = vor.u32 4788187, %v677_v32  ;;  %v681_v35 = vcvt.s32.f32 %v674_v31 }
 0x149   : > { %v679_v34 = vand.u32 2147483647, %v678_v33 }
 0x14b   : > { %v682_v36 = vmul.f32 %v681_v35, %v679_v34 }
 0x14d   : > { %v683_v38 = vxor.u32 2147483648, %v682_v36 }
 0x14f   : > { %v684_v39 = vsel %vm601_vm10, %v683_v38, %v682_v36 }
 0x150   : > { %v687_v41 = vsel %vm600_vm11, %v1158_v23, %v684_v39 }
 0x151   : > { %1004 = vcosq.f32 %v687_v41 }
 0x152   : > { %1006 = vsinq.f32 %v687_v41 }
 0x15b   : > { %v1005_v46 = vpop.eup %1004 }
 0x15c   : > { %v1007_v47 = vpop.eup %1006  ;;  %v699_v48 = vxor.u32 2147483648, %v1005_v46 }
 0x15d   : > { %v696_v49 = vxor.u32 2147483648, %v1007_v47 }
 0x15e   : > { %v700_v28 = vsel %vm698_vm12, %v699_v48, %v1007_v47  ;;  %v804_v50 = vsel %vm802_vm13, %v699_v48, %v1007_v47 }
 0x15f   : > { %v697_v51 = vsel %vm695_vm14, %v1005_v46, %v696_v49  ;;  %v801_v52 = vsel %vm799_vm15, %v1005_v46, %v696_v49 }
 0x160   : > { %v701_v53 = vsel %vm694_vm0, %v697_v51, %v700_v28  ;;  %v805_v54 = vsel %vm798_vm1, %v801_v52, %v804_v50 }
 0x161   : > { %v702_v55 = vsel %vm691_vm2, nan, %v701_v53  ;;  %v806_v56 = vsel %vm691_vm2, nan, %v805_v54 }
 0x162   : > { %703 = vst [vmem:[%s134_s3] sm:$0xff] %v702_v55  ;;  %807 = vst [vmem:[%s134_s3 + $0x8] sm:$0xff] %v806_v56 }
 0x163   : > { %1021 = shalt.err (!%p1018_p3)
}
 0x164   : > { %s1022_s21 = scalar_lea.hbm %s1186_s7, 256  ;;  %s1026_s24 = scalar_lea.hbm %s1232_s2, 512 }
 0x165   : > { %p1023_p4 = scmp.ne.s32.totalorder %s1186_s7, %s1022_s21  ;;  %p1027_p9 = scmp.lt.u32.totalorder %s1186_s7, %s1232_s2 }
 0x166   : > { %p1028_p10 = scmp.lt.u32.totalorder %s1026_s24, %s1022_s21  ;;  %p1030_p12 = scmp.lt.u32.totalorder %s1022_s21, %s1186_s7 }
 0x167   : > { %p1024_p7 = pnand %p1023_p4, %p1134_p5 }
 0x168   : > { %p1029_p11 = por %p1028_p10, %p1027_p9 }
 0x169   : > { %p1025_p8 = pneg %p1024_p7 }
 0x16a   : > { %p1031_p13 = por %p1030_p12, %p1029_p11 }
 0x16c   : > { %p1032_p0 = pnand %p1031_p13, %p1025_p8 }
 0x16e   : > { %1035 = shalt.err (!%p1032_p0)
}
 0x16f   : > { %957 = dma.vmem_to_hbm [thread:$0]  (%p1134_p5), %s1188_s4, 256, %s1186_s7, %s809_s8  }
 0x170 PF: > { %p963_p1 = scmp.ge.s32.totalorder %s1070_s12, 2  ;;  %s835_s27 = sand.u32 1, %s1058_s9  }
 0x171   : > { %s836_s28 = scalar_lea.sflag [#allocation3], %s835_s27 }
 0x172   : > { %p960_p2 = pnand %p963_p1, %p1138_p6 }
 0x174   : > { %1053 = dma.done.wait (!%p960_p2), %s836_s28, 256  }
 0x175   : > { %1055 = vsyncadd (!%p960_p2), %s836_s28, 4294967040  ;;  %p12_p3 = scmp.ge.s32.totalorder %s1121_s15, 4   ;;  %s1235_s9 = smov %s1062_s10 }
 0x176   : > { %s1236_s10 = smov %s1066_s11  ;;  %s1237_s11 = smov %s1132_s18 }
 0x177   : > { %s1238_s12 = smov %s1121_s15  ;;  %14 = sbr.rel (!%p12_p3) target bundleno = 3 (0x3), region = 63 }
 0x17e   :  { %841 = vsyncpa [#allocation3], 1 }
 0x17f   :  { %843 = vsyncpa [#allocation3 + $0x1], 1 }

</bundles_post_ra>
